<compile_context>
chip_gen: v5e
topology: v5e:2x2
jax: 0.10.0
libtpu: 0.0.40
codegen_flags: <defaults>
</compile_context>

<pallas_src>
import functools

import jax
import jax.numpy as jnp
from jax.experimental import pallas as pl
from jax.experimental.pallas import tpu as pltpu

KH = KW = 3
BN_EPS = 1e-5


# ---------------------------------------------------------------------------
# Fused kernel: conv1(im2col)+bias+ReLU -> pool1 -> conv2(im2col)+bias+ReLU -> pool2
# One batch element per grid step; all intermediates in VMEM scratch.
# ---------------------------------------------------------------------------
def fused_imgnn_kernel(xp_ref, w1_ref, b1_ref, w2_ref, b2_ref,
                       o_ref, c1_ref, p1_ref, c2_ref,
                       *, P1h, P1w, P2h, P2w, L2):
    # xp_ref : (1, H*W, 9*Cin)  pre-built im2col patches for layer 1
    # w1_ref : (9*Cin, C1)      BN-scale-folded conv1 weights
    # b1_ref : (1, C1)          folded conv1+BN bias
    # w2_ref : (9*C1, C2)       BN-scale-folded conv2 weights
    # b2_ref : (1, C2)          folded conv2+BN bias
    # o_ref  : (1, P2h*P2w, C2) lane-dense output block
    # c1_ref : (H*W, C1)        conv1+BN+ReLU output, dense flat HW (row stride W)
    # p1_ref : (P1h*P1w, C1)    pool1 output, flat HW (row stride P1w)
    # c2_ref : (L2, C2)         conv2+BN+ReLU output, flat HW (row stride P1w)
    HW = xp_ref.shape[1]

    # ---- layer 1: single K=27 im2col matmul, fused bias + ReLU -------------
    a1 = jnp.dot(xp_ref[0], w1_ref[...], preferred_element_type=jnp.float32)
    c1_ref[...] = jnp.maximum(a1 + b1_ref[...], 0.0)

    # ---- maxpool 2x2/2 (layer 1): horizontal pair-max first ----------------
    # flat index = h*W + w; even/odd flat positions are even/odd columns.
    even1 = c1_ref[pl.ds(0, HW // 2, stride=2), :]
    odd1 = c1_ref[pl.ds(1, HW // 2, stride=2), :]
    hmax1 = jnp.maximum(even1, odd1)          # (H*P1w, C1), row stride P1w
    for ph in range(P1h):                     # vertical pair-max, contiguous slices
        top = hmax1[(2 * ph) * P1w:(2 * ph + 1) * P1w]
        bot = hmax1[(2 * ph + 1) * P1w:(2 * ph + 2) * P1w]
        p1_ref[pl.ds(ph * P1w, P1w), :] = jnp.maximum(top, bot)

    # ---- layer 2: in-kernel im2col (9 shifted flat slices, lane concat) ----
    # Shift trick: tap (kh,kw) of the flat pool1 map (row stride P1w) is the
    # contiguous slice at offset kh*P1w + kw.  Columns w >= P1w-2 of the conv2
    # output are junk flat rows that are never read by pool2.
    pieces = [p1_ref[pl.ds(kh * P1w + kw, L2), :]
              for kh in range(KH) for kw in range(KW)]
    a2_cols = jnp.concatenate(pieces, axis=-1)            # (L2, 9*C1)
    a2 = jnp.dot(a2_cols, w2_ref[...], preferred_element_type=jnp.float32)
    c2_ref[...] = jnp.maximum(a2 + b2_ref[...], 0.0)

    # ---- maxpool 2x2/2 (layer 2): horizontal pair-max first ----------------
    half = P1w // 2                                        # hmax2 row stride
    n2 = (2 * P2h - 1) * half + P2w                        # strided rows needed
    even2 = c2_ref[pl.ds(0, n2, stride=2), :]
    odd2 = c2_ref[pl.ds(1, n2, stride=2), :]
    hmax2 = jnp.maximum(even2, odd2)
    rows = []
    for ph in range(P2h):
        top = hmax2[(2 * ph) * half:(2 * ph) * half + P2w]
        bot = hmax2[(2 * ph + 1) * half:(2 * ph + 1) * half + P2w]
        rows.append(jnp.maximum(top, bot))
    o_ref[0] = jnp.concatenate(rows, axis=0)               # single dense (9,C2) store


# ---------------------------------------------------------------------------
# Wrapper
# ---------------------------------------------------------------------------
def fold_bn(conv_bias, gamma, beta, running_mean, running_var):
    scale = gamma / jnp.sqrt(running_var + BN_EPS)
    bias = scale * (conv_bias - running_mean) + beta
    return scale, bias


def imgnn_forward(x_nchw, p):
    N, Cin, H, W = x_nchw.shape
    C1 = p["w1"].shape[-1]
    C2 = p["w2"].shape[-1]

    # Static shape checks so the flat-HW "junk columns are never read" trick
    # fails loudly for unexpected sizes instead of silently reading garbage.
    assert H % 2 == 0 and W % 2 == 0, "even spatial dims expected"
    P1h, P1w = H // 2, W // 2
    assert P1h >= KH and P1w >= KW, "pool1 output too small for 3x3 valid conv"
    H2, W2 = P1h - 2, P1w - 2
    assert H2 > 0 and W2 > 0 and H2 % 2 == 0 and W2 % 2 == 0
    L2 = (H2 - 1) * P1w + W2
    P2h, P2w = H2 // 2, W2 // 2
    assert (KH - 1) * P1w + (KW - 1) + L2 <= P1h * P1w     # im2col reads in-bounds
    assert (2 * P2h - 1) * P1w + 2 * P2w - 1 < L2          # pool2 reads in-bounds

    # NCHW -> NHWC, zero-pad, build layer-1 im2col patches (kh,kw,cin order).
    # These fuse into the single small XLA transpose fusion needed anyway.
    x = jnp.transpose(x_nchw, (0, 2, 3, 1)).astype(jnp.float32)
    xpad = jnp.pad(x, ((0, 0), (1, 1), (1, 1), (0, 0)))
    patches = [xpad[:, kh:kh + H, kw:kw + W, :]
               for kh in range(KH) for kw in range(KW)]
    xp = jnp.concatenate(patches, axis=-1).reshape(N, H * W, KH * KW * Cin)

    # Fold BN(eval) scale into the conv weights; keep only the bias.
    s1, b1 = fold_bn(p["b1"], p["gamma1"], p["beta1"], p["mean1"], p["var1"])
    s2, b2 = fold_bn(p["b2"], p["gamma2"], p["beta2"], p["mean2"], p["var2"])
    w1f = (p["w1"] * s1).reshape(KH * KW * Cin, C1).astype(jnp.float32)
    w2f = (p["w2"] * s2).reshape(KH * KW * C1, C2).astype(jnp.float32)
    b1f = b1.reshape(1, C1).astype(jnp.float32)
    b2f = b2.reshape(1, C2).astype(jnp.float32)

    kernel = functools.partial(
        fused_imgnn_kernel, P1h=P1h, P1w=P1w, P2h=P2h, P2w=P2w, L2=L2)

    out_flat = pl.pallas_call(
        kernel,
        out_shape=jax.ShapeDtypeStruct((N, P2h * P2w, C2), jnp.float32),
        grid=(N,),
        in_specs=[
            pl.BlockSpec((1, H * W, KH * KW * Cin), lambda n: (n, 0, 0)),
            pl.BlockSpec((KH * KW * Cin, C1), lambda n: (0, 0)),
            pl.BlockSpec((1, C1), lambda n: (0, 0)),
            pl.BlockSpec((KH * KW * C1, C2), lambda n: (0, 0)),
            pl.BlockSpec((1, C2), lambda n: (0, 0)),
        ],
        out_specs=pl.BlockSpec((1, P2h * P2w, C2), lambda n: (n, 0, 0)),
        scratch_shapes=[
            pltpu.VMEM((H * W, C1), jnp.float32),      # conv1+BN+ReLU (dense flat HW)
            pltpu.VMEM((P1h * P1w, C1), jnp.float32),  # pool1 output  (flat HW)
            pltpu.VMEM((L2, C2), jnp.float32),         # conv2+BN+ReLU (flat HW)
        ],
        compiler_params=pltpu.CompilerParams(dimension_semantics=("parallel",)),
    )(xp, w1f, b1f, w2f, b2f)

    # Dropout2d(p=0.3) / Dropout2d(p=0.12): identity at inference.
    out_nhwc = out_flat.reshape(N, P2h, P2w, C2)
    return jnp.transpose(out_nhwc, (0, 3, 1, 2))           # NHWC -> NCHW


# ---------------------------------------------------------------------------
# Pure-JAX reference (for correctness check only)
# ---------------------------------------------------------------------------
def reference_forward(x_nchw, p):
    x = jnp.transpose(x_nchw, (0, 2, 3, 1))

    def block(x, w, b, gamma, beta, mean, var, pad):
        y = jax.lax.conv_general_dilated(
            x, w, window_strides=(1, 1), padding=[(pad, pad), (pad, pad)],
            dimension_numbers=("NHWC", "HWIO", "NHWC")) + b
        y = gamma * (y - mean) / jnp.sqrt(var + BN_EPS) + beta
        y = jnp.maximum(y, 0.0)
        y = jax.lax.reduce_window(y, -jnp.inf, jax.lax.max,
                                  (1, 2, 2, 1), (1, 2, 2, 1), "VALID")
        return y

    y = block(x, p["w1"], p["b1"], p["gamma1"], p["beta1"], p["mean1"],
              p["var1"], 1)
    y = block(y, p["w2"], p["b2"], p["gamma2"], p["beta2"], p["mean2"],
              p["var2"], 0)
    return jnp.transpose(y, (0, 3, 1, 2))


# ---------------------------------------------------------------------------
# Deterministic parameter init (shapes from imgNN.__init__)
# ---------------------------------------------------------------------------
def init_params(key):
    ks = jax.random.split(key, 12)
    p = {}
    p["w1"] = 0.10 * jax.random.normal(ks[0], (3, 3, 3, 16), jnp.float32)
    p["b1"] = 0.10 * jax.random.normal(ks[1], (16,), jnp.float32)
    p["gamma1"] = 1.0 + 0.1 * jax.random.normal(ks[2], (16,), jnp.float32)
    p["beta1"] = 0.1 * jax.random.normal(ks[3], (16,), jnp.float32)
    p["mean1"] = 0.05 * jax.random.normal(ks[4], (16,), jnp.float32)
    p["var1"] = 1.0 + 0.1 * jnp.abs(jax.random.normal(ks[5], (16,), jnp.float32))

    p["w2"] = 0.05 * jax.random.normal(ks[6], (3, 3, 16, 32), jnp.float32)
    p["b2"] = 0.10 * jax.random.normal(ks[7], (32,), jnp.float32)
    p["gamma2"] = 1.0 + 0.1 * jax.random.normal(ks[8], (32,), jnp.float32)
    p["beta2"] = 0.1 * jax.random.normal(ks[9], (32,), jnp.float32)
    p["mean2"] = 0.05 * jax.random.normal(ks[10], (32,), jnp.float32)
    p["var2"] = 1.0 + 0.1 * jnp.abs(jax.random.normal(ks[11], (32,), jnp.float32))
    return p


if __name__ == "__main__":
    key = jax.random.PRNGKey(0)
    kx, kp = jax.random.split(key)
    x = jax.random.normal(kx, (2, 3, 16, 16), jnp.float32)   # NCHW, like PyTorch
    params = init_params(kp)

    out = jax.block_until_ready(imgnn_forward(x, params))
    ref = jax.block_until_ready(reference_forward(x, params))

    assert out.shape == (2, 32, 3, 3), out.shape
    err = float(jnp.max(jnp.abs(out - ref)))
    assert jnp.allclose(out, ref, atol=5e-4, rtol=5e-4), f"max abs err = {err}"
    print("KERNEL_OK")
</pallas_src>

<mosaic_0001>
module attributes {stable_mosaic.version = 11 : i64} {
  func.func @fused_imgnn_kernel(%arg0: i32, %arg1: memref<1x256x27xf32, #tpu.memory_space<vmem>>, %arg2: memref<27x16xf32, #tpu.memory_space<vmem>>, %arg3: memref<1x16xf32, #tpu.memory_space<vmem>>, %arg4: memref<144x32xf32, #tpu.memory_space<vmem>>, %arg5: memref<1x32xf32, #tpu.memory_space<vmem>>, %arg6: memref<1x9x32xf32, #tpu.memory_space<vmem>>, %arg7: memref<256x16xf32, #tpu.memory_space<vmem>>, %arg8: memref<64x16xf32, #tpu.memory_space<vmem>>, %arg9: memref<46x32xf32, #tpu.memory_space<vmem>>) attributes {dimension_semantics = [#tpu.dimension_semantics<parallel>], iteration_bounds = array<i64: 2>, scalar_prefetch = 0 : i64, scratch_operands = 3 : i64, tpu.core_type = #tpu.core_type<tc>, window_params = [{transform_indices = @transform_0, window_bounds = array<i64: 1, 256, 27>}, {pipeline_mode = #tpu.pipeline_mode<synchronous>, transform_indices = @transform_1, window_bounds = array<i64: 27, 16>}, {pipeline_mode = #tpu.pipeline_mode<synchronous>, transform_indices = @transform_2, window_bounds = array<i64: 1, 16>}, {pipeline_mode = #tpu.pipeline_mode<synchronous>, transform_indices = @transform_3, window_bounds = array<i64: 144, 32>}, {pipeline_mode = #tpu.pipeline_mode<synchronous>, transform_indices = @transform_4, window_bounds = array<i64: 1, 32>}, {transform_indices = @transform_5, window_bounds = array<i64: 1, 9, 32>}]} {
    %c0 = arith.constant 0 : index
    %c0_0 = arith.constant 0 : index
    %c0_1 = arith.constant 0 : index
    %0 = vector.load %arg1[%c0, %c0_0, %c0_1] : memref<1x256x27xf32, #tpu.memory_space<vmem>>, vector<1x256x27xf32>
    %1 = vector.shape_cast %0 : vector<1x256x27xf32> to vector<256x27xf32>
    %c0_2 = arith.constant 0 : index
    %c0_3 = arith.constant 0 : index
    %2 = vector.load %arg2[%c0_2, %c0_3] : memref<27x16xf32, #tpu.memory_space<vmem>>, vector<27x16xf32>
    %cst = arith.constant dense<0.000000e+00> : vector<256x16xf32>
    %3 = tpu.matmul %1, %2, %cst {dimension_numbers = #tpu.dot_dimension_numbers<[1], [0], [0], [1], [0, 0, 1, 1], [], []>} : vector<256x27xf32>, vector<27x16xf32>, vector<256x16xf32> -> vector<256x16xf32>
    %c0_4 = arith.constant 0 : index
    %c0_5 = arith.constant 0 : index
    %4 = vector.load %arg3[%c0_4, %c0_5] : memref<1x16xf32, #tpu.memory_space<vmem>>, vector<1x16xf32>
    %5 = vector.broadcast %4 : vector<1x16xf32> to vector<256x16xf32>
    %6 = arith.addf %3, %5 : vector<256x16xf32>
    %cst_6 = arith.constant 0.000000e+00 : f32
    %7 = vector.broadcast %cst_6 : f32 to vector<256x16xf32>
    %8 = arith.maximumf %6, %7 : vector<256x16xf32>
    %c0_7 = arith.constant 0 : index
    %c0_8 = arith.constant 0 : index
    %9 = vector.load %arg7[%c0_7, %c0_8] : memref<256x16xf32, #tpu.memory_space<vmem>>, vector<256x16xf32>
    tpu.vector_store %arg7[%c0_7, %c0_8], %8 {strides = array<i32>} : memref<256x16xf32, #tpu.memory_space<vmem>>, vector<256x16xf32>,
    %c0_9 = arith.constant 0 : index
    %c0_10 = arith.constant 0 : index
    %10 = tpu.strided_load %arg7[%c0_9, %c0_10] {strides = array<i32: 2, 1>} : memref<256x16xf32, #tpu.memory_space<vmem>>, vector<128x16xf32>
    %c1 = arith.constant 1 : index
    %c0_11 = arith.constant 0 : index
    %11 = tpu.strided_load %arg7[%c1, %c0_11] {strides = array<i32: 2, 1>} : memref<256x16xf32, #tpu.memory_space<vmem>>, vector<128x16xf32>
    %12 = arith.maximumf %10, %11 : vector<128x16xf32>
    %13 = vector.extract_strided_slice %12 {offsets = [0, 0], sizes = [8, 16], strides = [1, 1]} : vector<128x16xf32> to vector<8x16xf32>
    %14 = vector.extract_strided_slice %12 {offsets = [8, 0], sizes = [8, 16], strides = [1, 1]} : vector<128x16xf32> to vector<8x16xf32>
    %15 = arith.maximumf %13, %14 : vector<8x16xf32>
    %c0_12 = arith.constant 0 : index
    %c0_13 = arith.constant 0 : index
    %16 = vector.load %arg8[%c0_12, %c0_13] : memref<64x16xf32, #tpu.memory_space<vmem>>, vector<8x16xf32>
    tpu.vector_store %arg8[%c0_12, %c0_13], %15 {strides = array<i32>} : memref<64x16xf32, #tpu.memory_space<vmem>>, vector<8x16xf32>,
    %17 = vector.extract_strided_slice %12 {offsets = [16, 0], sizes = [8, 16], strides = [1, 1]} : vector<128x16xf32> to vector<8x16xf32>
    %18 = vector.extract_strided_slice %12 {offsets = [24, 0], sizes = [8, 16], strides = [1, 1]} : vector<128x16xf32> to vector<8x16xf32>
    %19 = arith.maximumf %17, %18 : vector<8x16xf32>
    %c8 = arith.constant 8 : index
    %c0_14 = arith.constant 0 : index
    %20 = vector.load %arg8[%c8, %c0_14] : memref<64x16xf32, #tpu.memory_space<vmem>>, vector<8x16xf32>
    tpu.vector_store %arg8[%c8, %c0_14], %19 {strides = array<i32>} : memref<64x16xf32, #tpu.memory_space<vmem>>, vector<8x16xf32>,
    %21 = vector.extract_strided_slice %12 {offsets = [32, 0], sizes = [8, 16], strides = [1, 1]} : vector<128x16xf32> to vector<8x16xf32>
    %22 = vector.extract_strided_slice %12 {offsets = [40, 0], sizes = [8, 16], strides = [1, 1]} : vector<128x16xf32> to vector<8x16xf32>
    %23 = arith.maximumf %21, %22 : vector<8x16xf32>
    %c16 = arith.constant 16 : index
    %c0_15 = arith.constant 0 : index
    %24 = vector.load %arg8[%c16, %c0_15] : memref<64x16xf32, #tpu.memory_space<vmem>>, vector<8x16xf32>
    tpu.vector_store %arg8[%c16, %c0_15], %23 {strides = array<i32>} : memref<64x16xf32, #tpu.memory_space<vmem>>, vector<8x16xf32>,
    %25 = vector.extract_strided_slice %12 {offsets = [48, 0], sizes = [8, 16], strides = [1, 1]} : vector<128x16xf32> to vector<8x16xf32>
    %26 = vector.extract_strided_slice %12 {offsets = [56, 0], sizes = [8, 16], strides = [1, 1]} : vector<128x16xf32> to vector<8x16xf32>
    %27 = arith.maximumf %25, %26 : vector<8x16xf32>
    %c24 = arith.constant 24 : index
    %c0_16 = arith.constant 0 : index
    %28 = vector.load %arg8[%c24, %c0_16] : memref<64x16xf32, #tpu.memory_space<vmem>>, vector<8x16xf32>
    tpu.vector_store %arg8[%c24, %c0_16], %27 {strides = array<i32>} : memref<64x16xf32, #tpu.memory_space<vmem>>, vector<8x16xf32>,
    %29 = vector.extract_strided_slice %12 {offsets = [64, 0], sizes = [8, 16], strides = [1, 1]} : vector<128x16xf32> to vector<8x16xf32>
    %30 = vector.extract_strided_slice %12 {offsets = [72, 0], sizes = [8, 16], strides = [1, 1]} : vector<128x16xf32> to vector<8x16xf32>
    %31 = arith.maximumf %29, %30 : vector<8x16xf32>
    %c32 = arith.constant 32 : index
    %c0_17 = arith.constant 0 : index
    %32 = vector.load %arg8[%c32, %c0_17] : memref<64x16xf32, #tpu.memory_space<vmem>>, vector<8x16xf32>
    tpu.vector_store %arg8[%c32, %c0_17], %31 {strides = array<i32>} : memref<64x16xf32, #tpu.memory_space<vmem>>, vector<8x16xf32>,
    %33 = vector.extract_strided_slice %12 {offsets = [80, 0], sizes = [8, 16], strides = [1, 1]} : vector<128x16xf32> to vector<8x16xf32>
    %34 = vector.extract_strided_slice %12 {offsets = [88, 0], sizes = [8, 16], strides = [1, 1]} : vector<128x16xf32> to vector<8x16xf32>
    %35 = arith.maximumf %33, %34 : vector<8x16xf32>
    %c40 = arith.constant 40 : index
    %c0_18 = arith.constant 0 : index
    %36 = vector.load %arg8[%c40, %c0_18] : memref<64x16xf32, #tpu.memory_space<vmem>>, vector<8x16xf32>
    tpu.vector_store %arg8[%c40, %c0_18], %35 {strides = array<i32>} : memref<64x16xf32, #tpu.memory_space<vmem>>, vector<8x16xf32>,
    %37 = vector.extract_strided_slice %12 {offsets = [96, 0], sizes = [8, 16], strides = [1, 1]} : vector<128x16xf32> to vector<8x16xf32>
    %38 = vector.extract_strided_slice %12 {offsets = [104, 0], sizes = [8, 16], strides = [1, 1]} : vector<128x16xf32> to vector<8x16xf32>
    %39 = arith.maximumf %37, %38 : vector<8x16xf32>
    %c48 = arith.constant 48 : index
    %c0_19 = arith.constant 0 : index
    %40 = vector.load %arg8[%c48, %c0_19] : memref<64x16xf32, #tpu.memory_space<vmem>>, vector<8x16xf32>
    tpu.vector_store %arg8[%c48, %c0_19], %39 {strides = array<i32>} : memref<64x16xf32, #tpu.memory_space<vmem>>, vector<8x16xf32>,
    %41 = vector.extract_strided_slice %12 {offsets = [112, 0], sizes = [8, 16], strides = [1, 1]} : vector<128x16xf32> to vector<8x16xf32>
    %42 = vector.extract_strided_slice %12 {offsets = [120, 0], sizes = [8, 16], strides = [1, 1]} : vector<128x16xf32> to vector<8x16xf32>
    %43 = arith.maximumf %41, %42 : vector<8x16xf32>
    %c56 = arith.constant 56 : index
    %c0_20 = arith.constant 0 : index
    %44 = vector.load %arg8[%c56, %c0_20] : memref<64x16xf32, #tpu.memory_space<vmem>>, vector<8x16xf32>
    tpu.vector_store %arg8[%c56, %c0_20], %43 {strides = array<i32>} : memref<64x16xf32, #tpu.memory_space<vmem>>, vector<8x16xf32>,
    %c0_21 = arith.constant 0 : index
    %c0_22 = arith.constant 0 : index
    %45 = vector.load %arg8[%c0_21, %c0_22] : memref<64x16xf32, #tpu.memory_space<vmem>>, vector<46x16xf32>
    %c1_23 = arith.constant 1 : index
    %c0_24 = arith.constant 0 : index
    %46 = vector.load %arg8[%c1_23, %c0_24] : memref<64x16xf32, #tpu.memory_space<vmem>>, vector<46x16xf32>
    %c2 = arith.constant 2 : index
    %c0_25 = arith.constant 0 : index
    %47 = vector.load %arg8[%c2, %c0_25] : memref<64x16xf32, #tpu.memory_space<vmem>>, vector<46x16xf32>
    %c8_26 = arith.constant 8 : index
    %c0_27 = arith.constant 0 : index
    %48 = vector.load %arg8[%c8_26, %c0_27] : memref<64x16xf32, #tpu.memory_space<vmem>>, vector<46x16xf32>
    %c9 = arith.constant 9 : index
    %c0_28 = arith.constant 0 : index
    %49 = vector.load %arg8[%c9, %c0_28] : memref<64x16xf32, #tpu.memory_space<vmem>>, vector<46x16xf32>
    %c10 = arith.constant 10 : index
    %c0_29 = arith.constant 0 : index
    %50 = vector.load %arg8[%c10, %c0_29] : memref<64x16xf32, #tpu.memory_space<vmem>>, vector<46x16xf32>
    %c16_30 = arith.constant 16 : index
    %c0_31 = arith.constant 0 : index
    %51 = vector.load %arg8[%c16_30, %c0_31] : memref<64x16xf32, #tpu.memory_space<vmem>>, vector<46x16xf32>
    %c17 = arith.constant 17 : index
    %c0_32 = arith.constant 0 : index
    %52 = vector.load %arg8[%c17, %c0_32] : memref<64x16xf32, #tpu.memory_space<vmem>>, vector<46x16xf32>
    %c18 = arith.constant 18 : index
    %c0_33 = arith.constant 0 : index
    %53 = vector.load %arg8[%c18, %c0_33] : memref<64x16xf32, #tpu.memory_space<vmem>>, vector<46x16xf32>
    %54 = tpu.concatenate %45, %46, %47, %48, %49, %50, %51, %52, %53 in 1 : vector<46x16xf32>, vector<46x16xf32>, vector<46x16xf32>, vector<46x16xf32>, vector<46x16xf32>, vector<46x16xf32>, vector<46x16xf32>, vector<46x16xf32>, vector<46x16xf32> -> vector<46x144xf32>
    %c0_34 = arith.constant 0 : index
    %c0_35 = arith.constant 0 : index
    %55 = vector.load %arg4[%c0_34, %c0_35] : memref<144x32xf32, #tpu.memory_space<vmem>>, vector<144x32xf32>
    %cst_36 = arith.constant dense<0.000000e+00> : vector<46x32xf32>
    %56 = tpu.matmul %54, %55, %cst_36 {dimension_numbers = #tpu.dot_dimension_numbers<[1], [0], [0], [1], [0, 0, 1, 1], [], []>} : vector<46x144xf32>, vector<144x32xf32>, vector<46x32xf32> -> vector<46x32xf32>
    %c0_37 = arith.constant 0 : index
    %c0_38 = arith.constant 0 : index
    %57 = vector.load %arg5[%c0_37, %c0_38] : memref<1x32xf32, #tpu.memory_space<vmem>>, vector<1x32xf32>
    %58 = vector.broadcast %57 : vector<1x32xf32> to vector<46x32xf32>
    %59 = arith.addf %56, %58 : vector<46x32xf32>
    %cst_39 = arith.constant 0.000000e+00 : f32
    %60 = vector.broadcast %cst_39 : f32 to vector<46x32xf32>
    %61 = arith.maximumf %59, %60 : vector<46x32xf32>
    %c0_40 = arith.constant 0 : index
    %c0_41 = arith.constant 0 : index
    %62 = vector.load %arg9[%c0_40, %c0_41] : memref<46x32xf32, #tpu.memory_space<vmem>>, vector<46x32xf32>
    tpu.vector_store %arg9[%c0_40, %c0_41], %61 {strides = array<i32>} : memref<46x32xf32, #tpu.memory_space<vmem>>, vector<46x32xf32>,
    %c0_42 = arith.constant 0 : index
    %c0_43 = arith.constant 0 : index
    %63 = tpu.strided_load %arg9[%c0_42, %c0_43] {strides = array<i32: 2, 1>} : memref<46x32xf32, #tpu.memory_space<vmem>>, vector<23x32xf32>
    %c1_44 = arith.constant 1 : index
    %c0_45 = arith.constant 0 : index
    %64 = tpu.strided_load %arg9[%c1_44, %c0_45] {strides = array<i32: 2, 1>} : memref<46x32xf32, #tpu.memory_space<vmem>>, vector<23x32xf32>
    %65 = arith.maximumf %63, %64 : vector<23x32xf32>
    %66 = vector.extract_strided_slice %65 {offsets = [0, 0], sizes = [3, 32], strides = [1, 1]} : vector<23x32xf32> to vector<3x32xf32>
    %67 = vector.extract_strided_slice %65 {offsets = [4, 0], sizes = [3, 32], strides = [1, 1]} : vector<23x32xf32> to vector<3x32xf32>
    %68 = arith.maximumf %66, %67 : vector<3x32xf32>
    %69 = vector.extract_strided_slice %65 {offsets = [8, 0], sizes = [3, 32], strides = [1, 1]} : vector<23x32xf32> to vector<3x32xf32>
    %70 = vector.extract_strided_slice %65 {offsets = [12, 0], sizes = [3, 32], strides = [1, 1]} : vector<23x32xf32> to vector<3x32xf32>
    %71 = arith.maximumf %69, %70 : vector<3x32xf32>
    %72 = vector.extract_strided_slice %65 {offsets = [16, 0], sizes = [3, 32], strides = [1, 1]} : vector<23x32xf32> to vector<3x32xf32>
    %73 = vector.extract_strided_slice %65 {offsets = [20, 0], sizes = [3, 32], strides = [1, 1]} : vector<23x32xf32> to vector<3x32xf32>
    %74 = arith.maximumf %72, %73 : vector<3x32xf32>
    %75 = tpu.concatenate %68, %71, %74 in 0 : vector<3x32xf32>, vector<3x32xf32>, vector<3x32xf32> -> vector<9x32xf32>
    %c0_46 = arith.constant 0 : index
    %c0_47 = arith.constant 0 : index
    %c0_48 = arith.constant 0 : index
    %76 = vector.load %arg6[%c0_46, %c0_47, %c0_48] : memref<1x9x32xf32, #tpu.memory_space<vmem>>, vector<1x9x32xf32>
    %77 = vector.shape_cast %76 : vector<1x9x32xf32> to vector<9x32xf32>
    %78 = vector.shape_cast %75 : vector<9x32xf32> to vector<1x9x32xf32>
    tpu.vector_store %arg6[%c0_46, %c0_47, %c0_48], %78 {strides = array<i32>} : memref<1x9x32xf32, #tpu.memory_space<vmem>>, vector<1x9x32xf32>,
    return
  }
  func.func @transform_0(%arg0: i32) -> (i32, i32, i32) {
    %c0_i32 = arith.constant 0 : i32
    %c0_i32_0 = arith.constant 0 : i32
    %c0_i32_1 = arith.constant 0 : i32
    return %arg0, %c0_i32, %c0_i32_0 : i32, i32, i32
  }
  func.func @transform_1(%arg0: i32) -> (i32, i32) {
    %c0_i32 = arith.constant 0 : i32
    %c0_i32_0 = arith.constant 0 : i32
    %c0_i32_1 = arith.constant 0 : i32
    return %c0_i32, %c0_i32_0 : i32, i32
  }
  func.func @transform_2(%arg0: i32) -> (i32, i32) {
    %c0_i32 = arith.constant 0 : i32
    %c0_i32_0 = arith.constant 0 : i32
    %c0_i32_1 = arith.constant 0 : i32
    return %c0_i32, %c0_i32_0 : i32, i32
  }
  func.func @transform_3(%arg0: i32) -> (i32, i32) {
    %c0_i32 = arith.constant 0 : i32
    %c0_i32_0 = arith.constant 0 : i32
    %c0_i32_1 = arith.constant 0 : i32
    return %c0_i32, %c0_i32_0 : i32, i32
  }
  func.func @transform_4(%arg0: i32) -> (i32, i32) {
    %c0_i32 = arith.constant 0 : i32
    %c0_i32_0 = arith.constant 0 : i32
    %c0_i32_1 = arith.constant 0 : i32
    return %c0_i32, %c0_i32_0 : i32, i32
  }
  func.func @transform_5(%arg0: i32) -> (i32, i32, i32) {
    %c0_i32 = arith.constant 0 : i32
    %c0_i32_0 = arith.constant 0 : i32
    %c0_i32_1 = arith.constant 0 : i32
    return %arg0, %c0_i32, %c0_i32_0 : i32, i32, i32
  }
}

</mosaic_0001>

<bundles_post_ra>
// kernel: tpu_custom_call.1
= control target key start
LH: loop header
LB: loop body
LE: loop exit
PB: predicated region body
PF: predicated region fallthrough
CT: control target
= control target key end

     0   :  { %s1295_s18 = smov 0   ;;  %s1660_s0 = inlined_call_operand.vmem [shape: f32[2,256,27], index: 0, kind: input, shape index: {}]   ;;  %s1661_s1 = inlined_call_operand.vmem [shape: f32[27,16], index: 1, kind: input, shape index: {}]   ;;  %s1662_s2 = inlined_call_operand.vmem [shape: f32[1,16], index: 2, kind: input, shape index: {}]   ;;  %s1663_s3 = inlined_call_operand.vmem [shape: f32[144,32], index: 3, kind: input, shape index: {}]   ;;  %s1664_s4 = inlined_call_operand.vmem [shape: f32[1,32], index: 4, kind: input, shape index: {}]   ;;  %s1665_s5 = inlined_call_operand.vmem [shape: f32[2,9,32], index: 5, kind: output, shape index: {}]  }
   0x1 LB: > { %s1081_s19 = sadd.s32 4294967295, %s1256_s18   ;;  %p1085_p0 = scmp.ge.s32.totalorder %s1256_s18, 1  ;;  %s1256_s18 = sphi %s1295_s18, %s15_s18  }
   0x2   : > { %p187_p1 = scmp.lt.s32.totalorder %s1256_s18, 3 }
   0x4   : > { %p188_p2 = pnand %p1085_p0, %p187_p1 }
   0x5   : > { %p215_p3 = scmp.lt.s32.totalorder (!%p188_p2), %s1081_s19, 1  ;;  %s1258_s13 = smov (!%p188_p2), 80  }
   0x6   : > { %191 = sbr.rel (%p188_p2) target bundleno = 599 (0x257), region = 40  ;;  %s1259_s14 = smov (!%p188_p2), 48  }
   0x7   : > { %s1260_s15 = smov (!%p188_p2), 16   ;;  %s1261_s16 = smov (!%p188_p2), 96  }
   0x8   : > { %s1262_s17 = smov (!%p188_p2), 64   ;;  %s1263_s20 = smov (!%p188_p2), 32  }
   0x9   : > { %s1264_s21 = smov (!%p188_p2), 112  }
   0xb   : > { %v260_v0 = vld [vmem:[%s1661_s1 + $0x18] sm:$0x7]  ;;  %vm362_vm0 = vcmask 1042432   ;;  %v259_v1 = vld [vmem:[%s1661_s1 + $0x10] sm:$0xff]  ;;  %v258_v2 = vld [vmem:[%s1661_s1 + $0x8] sm:$0xff]  ;;  %s1667_s19 = smov (!%p215_p3, %s1081_s19), 1 }
   0xc   : > { %1090 = vmatpush.msk.msra.mxu0 %vm362_vm0, %v260_v0  ;;  %1133 = vmatpush.msk.msra.mxu2 %vm362_vm0, %v260_v0  ;;  %v257_v3 = vld [vmem:[%s1661_s1] sm:$0xff]  ;;  %s1131_s28 = sshll.u32 %s1667_s19, 8  ;;  %vm265_vm1 = vcmask 220160   ;;  %vm511_vm2 = vcmask 130048   ;;  %vm827_vm3 = vcmask 261120   ;;  %vm834_vm4 = vcmask 392192  }
   0xd   : > { %1134 = vmatpush.msk.msra.mxu3 %vm362_vm0, %v260_v0  ;;  %s1324_s6 = scalar_lea.vmem %s1660_s0, %s1131_s28  ;;  %v1393_v36 = vld [vmem:[%s1662_s2] ss:$0 sm:$0xff]  ;;  %vm841_vm5 = vcmask 523264   ;;  %vm848_vm6 = vcmask 654336   ;;  %vm855_vm7 = vcmask 785408   ;;  %vm862_vm8 = vcmask 916480  }
   0xe   : > { %379 = vmatpush.msra.mxu0 %v259_v1  ;;  %1135 = vmatpush.msra.mxu2 %v259_v1  ;;  %v225_v4 = vld [vmem:[%s1324_s6] sm:$0xff]  ;;  %v226_v7 = vld [vmem:[%s1324_s6 + $0x8] sm:$0xff]  ;;  %v227_v10 = vld [vmem:[%s1324_s6 + $0x10] sm:$0xff]  ;;  %vm986_vm9 = vcmask 259072   ;;  %s1132_s8 = sshll.u32 %s1667_s19, 4  ;;  %vm1024_vm10 = vcmask 253952  }
   0xf   : > { %1136 = vmatpush.msra.mxu3 %v259_v1  ;;  %v237_v5 = vld [vmem:[%s1324_s6 + $0x60] sm:$0xff]  ;;  %v238_v8 = vld [vmem:[%s1324_s6 + $0x68] sm:$0xff]  ;;  %v239_v11 = vld [vmem:[%s1324_s6 + $0x70] sm:$0xff]  ;;  %s224_s11 = scalar_lea.vmem %s1665_s5, %s1132_s8  ;;  %vm1021_vm11 = vcmask 1045504  }
  0x10   : > { %380 = vmatpush.msra.mxu0 %v258_v2  ;;  %1137 = vmatpush.msra.mxu2 %v258_v2  ;;  %v245_v6 = vld [vmem:[%s1324_s6 + $0xa0] sm:$0xff]  ;;  %v246_v9 = vld [vmem:[%s1324_s6 + $0xa8] sm:$0xff]  ;;  %v247_v12 = vld [vmem:[%s1324_s6 + $0xb0] sm:$0xff] }
  0x11   : > { %1138 = vmatpush.msra.mxu3 %v258_v2  ;;  %v228_v13 = vld [vmem:[%s1324_s6 + $0x18] sm:$0xff]  ;;  %v229_v16 = vld [vmem:[%s1324_s6 + $0x20] sm:$0xff]  ;;  %v230_v19 = vld [vmem:[%s1324_s6 + $0x28] sm:$0xff] }
  0x12   : > { %381 = vmatpush.msra.mxu0 %v257_v3  ;;  %1139 = vmatpush.msra.mxu2 %v257_v3  ;;  %v240_v14 = vld [vmem:[%s1324_s6 + $0x78] sm:$0xff]  ;;  %v241_v17 = vld [vmem:[%s1324_s6 + $0x80] sm:$0xff]  ;;  %v242_v20 = vld [vmem:[%s1324_s6 + $0x88] sm:$0xff] }
  0x13   : > { %1140 = vmatpush.msra.mxu3 %v257_v3  ;;  %1091 = vmatmul.msk.f32.vlgmr.msra.gmra.mxu0 %vm265_vm1, %v225_v4  ;;  %v248_v15 = vld [vmem:[%s1324_s6 + $0xb8] sm:$0xff]  ;;  %v249_v18 = vld [vmem:[%s1324_s6 + $0xc0] sm:$0xff]  ;;  %v250_v21 = vld [vmem:[%s1324_s6 + $0xc8] sm:$0xff] }
  0x14   : > { %1103 = vmatmul.msk.f32.vlgmr.msra.gmra.mxu2 %vm265_vm1, %v237_v5  ;;  %1111 = vmatmul.msk.f32.vlgmr.msra.gmra.mxu3 %vm265_vm1, %v245_v6  ;;  %v231_v22 = vld [vmem:[%s1324_s6 + $0x30] sm:$0xff]  ;;  %v232_v25 = vld [vmem:[%s1324_s6 + $0x38] sm:$0xff]  ;;  %v233_v28 = vld [vmem:[%s1324_s6 + $0x40] sm:$0xff] }
  0x15   : > { %v243_v23 = vld [vmem:[%s1324_s6 + $0x90] sm:$0xff]  ;;  %v244_v26 = vld [vmem:[%s1324_s6 + $0x98] sm:$0xff]  ;;  %v253_v29 = vld [vmem:[%s1324_s6 + $0xe0] sm:$0xff] }
  0x16   : > { %v251_v24 = vld [vmem:[%s1324_s6 + $0xd0] sm:$0xff]  ;;  %v252_v27 = vld [vmem:[%s1324_s6 + $0xd8] sm:$0xff]  ;;  %v234_v30 = vld [vmem:[%s1324_s6 + $0x48] sm:$0xff] }
  0x17   : > { %v254_v31 = vld [vmem:[%s1324_s6 + $0xe8] sm:$0xff]  ;;  %v235_v32 = vld [vmem:[%s1324_s6 + $0x50] sm:$0xff]  ;;  %v236_v34 = vld [vmem:[%s1324_s6 + $0x58] sm:$0xff] }
  0x18   : > { %v255_v33 = vld [vmem:[%s1324_s6 + $0xf0] sm:$0xff]  ;;  %v256_v35 = vld [vmem:[%s1324_s6 + $0xf8] sm:$0xff] }
  0x1b   : > { %1092 = vmatmul.msk.f32.gmra.mxu0 %vm265_vm1, %v226_v7 }
  0x1c   : > { %1104 = vmatmul.msk.f32.gmra.mxu2 %vm265_vm1, %v238_v8  ;;  %1112 = vmatmul.msk.f32.gmra.mxu3 %vm265_vm1, %v246_v9 }
  0x23   : > { %1093 = vmatmul.msk.f32.gmra.mxu0 %vm265_vm1, %v227_v10 }
  0x24   : > { %1105 = vmatmul.msk.f32.gmra.mxu2 %vm265_vm1, %v239_v11  ;;  %1113 = vmatmul.msk.f32.gmra.mxu3 %vm265_vm1, %v247_v12 }
  0x2b   : > { %1094 = vmatmul.msk.f32.gmra.mxu0 %vm265_vm1, %v228_v13 }
  0x2c   : > { %1106 = vmatmul.msk.f32.gmra.mxu2 %vm265_vm1, %v240_v14  ;;  %1114 = vmatmul.msk.f32.gmra.mxu3 %vm265_vm1, %v248_v15 }
  0x33   : > { %1095 = vmatmul.msk.f32.gmra.mxu0 %vm265_vm1, %v229_v16 }
  0x34   : > { %1107 = vmatmul.msk.f32.gmra.mxu2 %vm265_vm1, %v241_v17  ;;  %1115 = vmatmul.msk.f32.gmra.mxu3 %vm265_vm1, %v249_v18 }
  0x3b   : > { %1096 = vmatmul.msk.f32.gmra.mxu0 %vm265_vm1, %v230_v19 }
  0x3c   : > { %1108 = vmatmul.msk.f32.gmra.mxu2 %vm265_vm1, %v242_v20  ;;  %1116 = vmatmul.msk.f32.gmra.mxu3 %vm265_vm1, %v250_v21 }
  0x43   : > { %1097 = vmatmul.msk.f32.gmra.mxu0 %vm265_vm1, %v231_v22 }
  0x44   : > { %1109 = vmatmul.msk.f32.gmra.mxu2 %vm265_vm1, %v243_v23  ;;  %1117 = vmatmul.msk.f32.gmra.mxu3 %vm265_vm1, %v251_v24 }
  0x4b   : > { %1098 = vmatmul.msk.f32.gmra.mxu0 %vm265_vm1, %v232_v25 }
  0x4c   : > { %1110 = vmatmul.msk.f32.gmra.mxu2 %vm265_vm1, %v244_v26  ;;  %1118 = vmatmul.msk.f32.gmra.mxu3 %vm265_vm1, %v252_v27 }
  0x53   : > { %1099 = vmatmul.msk.f32.gmra.mxu0 %vm265_vm1, %v233_v28 }
  0x54   : > { %1119 = vmatmul.msk.f32.gmra.mxu3 %vm265_vm1, %v253_v29 }
  0x5b   : > { %1100 = vmatmul.msk.f32.gmra.mxu0 %vm265_vm1, %v234_v30 }
  0x5c   : > { %1120 = vmatmul.msk.f32.gmra.mxu3 %vm265_vm1, %v254_v31 }
  0x63   : > { %1101 = vmatmul.msk.f32.gmra.mxu0 %vm265_vm1, %v235_v32 }
  0x64   : > { %1121 = vmatmul.msk.f32.gmra.mxu3 %vm265_vm1, %v255_v33 }
  0x6b   : > { %1102 = vmatmul.msk.f32.gmra.mxu0 %vm265_vm1, %v236_v34 }
  0x6c   : > { %1122 = vmatmul.msk.f32.gmra.mxu3 %vm265_vm1, %v256_v35 }
  0x90   : > { %v383_v37 = vpop.f32.mrf.mxu0 }
  0x91   : > { %v384_v38 = vadd.f32 %v1393_v36, %v383_v37 }
  0x93   : > { %v479_v39 = vmax.f32 %v384_v38, 0.0 }
  0x95   : > { %512 = vst.msk [vmem:[#allocation2] sm:$0xff] %vm511_vm2, %v479_v39 }
  0x97   : > { %v419_v40 = vpop.f32.mrf.mxu2  ;;  %v443_v41 = vpop.f32.mrf.mxu3 }
  0x98   : > { %v420_v42 = vadd.f32 %v1393_v36, %v419_v40  ;;  %v444_v43 = vadd.f32 %v1393_v36, %v443_v41  ;;  %v386_v44 = vpop.f32.mrf.mxu0 }
  0x99   : > { %v387_v45 = vadd.f32 %v1393_v36, %v386_v44 }
  0x9a   : > { %v491_v46 = vmax.f32 %v420_v42, 0.0  ;;  %v499_v47 = vmax.f32 %v444_v43, 0.0 }
  0x9b   : > { %v480_v48 = vmax.f32 %v387_v45, 0.0 }
  0x9c   : > { %524 = vst.msk [vmem:[#allocation2 + $0x60] sm:$0xff] %vm511_vm2, %v491_v46 }
  0x9d   : > { %532 = vst.msk [vmem:[#allocation2 + $0xa0] sm:$0xff] %vm511_vm2, %v499_v47 }
  0x9e   : > { %513 = vst.msk [vmem:[#allocation2 + $0x8] sm:$0xff] %vm511_vm2, %v480_v48 }
  0x9f   : > { %v422_v49 = vpop.f32.mrf.mxu2  ;;  %v446_v50 = vpop.f32.mrf.mxu3 }
  0xa0   : > { %v423_v51 = vadd.f32 %v1393_v36, %v422_v49  ;;  %v447_v52 = vadd.f32 %v1393_v36, %v446_v50  ;;  %v389_v53 = vpop.f32.mrf.mxu0 }
  0xa1   : > { %v390_v54 = vadd.f32 %v1393_v36, %v389_v53 }
  0xa2   : > { %v492_v55 = vmax.f32 %v423_v51, 0.0  ;;  %v500_v56 = vmax.f32 %v447_v52, 0.0  ;;  %v1438_v52 = vld [vmem:[%s1663_s3 + $0x88] sm:$0xff] }
  0xa3   : > { %v481_v57 = vmax.f32 %v390_v54, 0.0  ;;  %1141 = vmatpush.msrb.mxu2 %v1438_v52 }
  0xa4   : > { %525 = vst.msk [vmem:[#allocation2 + $0x68] sm:$0xff] %vm511_vm2, %v492_v55  ;;  %v1445_v55 = vld [vmem:[%s1663_s3 + $0x80] sm:$0xff] }
  0xa5   : > { %533 = vst.msk [vmem:[#allocation2 + $0xa8] sm:$0xff] %vm511_vm2, %v500_v56  ;;  %v544_v11 = vld [vmem:[#allocation2] ss:$2 sm:$0xff]  ;;  %v576_v12 = vld [vmem:[#allocation2 + $0x1] ss:$2 sm:$0xff]  ;;  %1142 = vmatpush.msrb.mxu2 %v1445_v55 }
  0xa6   : > { %514 = vst.msk [vmem:[#allocation2 + $0x10] sm:$0xff] %vm511_vm2, %v481_v57  ;;  %v607_v16 = vmax.f32 %v544_v11, %v576_v12 }
  0xa7   : > { %v425_v58 = vpop.f32.mrf.mxu2  ;;  %v449_v59 = vpop.f32.mrf.mxu3 }
  0xa8   : > { %v426_v60 = vadd.f32 %v1393_v36, %v425_v58  ;;  %v450_v61 = vadd.f32 %v1393_v36, %v449_v59  ;;  %v392_v62 = vpop.f32.mrf.mxu0 }
  0xa9   : > { %v393_v63 = vadd.f32 %v1393_v36, %v392_v62 }
  0xaa   : > { %v493_v0 = vmax.f32 %v426_v60, 0.0  ;;  %v501_v1 = vmax.f32 %v450_v61, 0.0 }
  0xab   : > { %v482_v2 = vmax.f32 %v393_v63, 0.0  ;;  %v556_v18 = vld [vmem:[#allocation2 + $0x60] ss:$2 sm:$0xff]  ;;  %v588_v19 = vld [vmem:[#allocation2 + $0x61] ss:$2 sm:$0xff] }
  0xac   : > { %526 = vst.msk [vmem:[#allocation2 + $0x70] sm:$0xff] %vm511_vm2, %v493_v0  ;;  %v564_v22 = vld [vmem:[#allocation2 + $0xa0] ss:$2 sm:$0xff]  ;;  %v596_v23 = vld [vmem:[#allocation2 + $0xa1] ss:$2 sm:$0xff]  ;;  %v613_v29 = vmax.f32 %v556_v18, %v588_v19 }
  0xad   : > { %534 = vst.msk [vmem:[#allocation2 + $0xb0] sm:$0xff] %vm511_vm2, %v501_v1  ;;  %v617_v32 = vmax.f32 %v564_v22, %v596_v23 }
  0xae   : > { %515 = vst.msk [vmem:[#allocation2 + $0x18] sm:$0xff] %vm511_vm2, %v482_v2 }
  0xaf   : > { %v428_v3 = vpop.f32.mrf.mxu2  ;;  %v452_v4 = vpop.f32.mrf.mxu3 }
  0xb0   : > { %v429_v5 = vadd.f32 %v1393_v36, %v428_v3  ;;  %v453_v6 = vadd.f32 %v1393_v36, %v452_v4  ;;  %v395_v7 = vpop.f32.mrf.mxu0 }
  0xb1   : > { %v396_v8 = vadd.f32 %v1393_v36, %v395_v7 }
  0xb2   : > { %v494_v9 = vmax.f32 %v429_v5, 0.0  ;;  %v502_v10 = vmax.f32 %v453_v6, 0.0 }
  0xb3   : > { %v483_v13 = vmax.f32 %v396_v8, 0.0 }
  0xb4   : > { %527 = vst.msk [vmem:[#allocation2 + $0x78] sm:$0xff] %vm511_vm2, %v494_v9 }
  0xb5   : > { %v546_v14 = vld [vmem:[#allocation2 + $0x10] ss:$2 sm:$0xff]  ;;  %v578_v15 = vld [vmem:[#allocation2 + $0x11] ss:$2 sm:$0xff]  ;;  %535 = vst.msk [vmem:[#allocation2 + $0xb8] sm:$0xff] %vm511_vm2, %v502_v10 }
  0xb6   : > { %v608_v17 = vmax.f32 %v546_v14, %v578_v15  ;;  %516 = vst.msk [vmem:[#allocation2 + $0x20] sm:$0xff] %vm511_vm2, %v483_v13 }
  0xb7   : > { %v431_v20 = vpop.f32.mrf.mxu2  ;;  %v455_v21 = vpop.f32.mrf.mxu3 }
  0xb8   : > { %v623_v24 = vmax.f32 %v607_v16, %v608_v17  ;;  %v432_v25 = vadd.f32 %v1393_v36, %v431_v20  ;;  %v456_v26 = vadd.f32 %v1393_v36, %v455_v21  ;;  %v398_v27 = vpop.f32.mrf.mxu0 }
  0xb9   : > { %v399_v28 = vadd.f32 %v1393_v36, %v398_v27 }
  0xba   : > { %624 = vst.msk [vmem:[#allocation3] sm:$0xff] %vm511_vm2, %v623_v24  ;;  %v495_v30 = vmax.f32 %v432_v25, 0.0  ;;  %v503_v31 = vmax.f32 %v456_v26, 0.0 }
  0xbb   : > { %v558_v33 = vld [vmem:[#allocation2 + $0x70] ss:$2 sm:$0xff]  ;;  %v590_v34 = vld [vmem:[#allocation2 + $0x71] ss:$2 sm:$0xff]  ;;  %v484_v35 = vmax.f32 %v399_v28, 0.0 }
  0xbc   : > { %v614_v37 = vmax.f32 %v558_v33, %v590_v34  ;;  %v566_v38 = vld [vmem:[#allocation2 + $0xb0] ss:$2 sm:$0xff]  ;;  %v598_v39 = vld [vmem:[#allocation2 + $0xb1] ss:$2 sm:$0xff]  ;;  %528 = vst.msk [vmem:[#allocation2 + $0x80] sm:$0xff] %vm511_vm2, %v495_v30 }
  0xbd   : > { %v618_v40 = vmax.f32 %v566_v38, %v598_v39  ;;  %536 = vst.msk [vmem:[#allocation2 + $0xc0] sm:$0xff] %vm511_vm2, %v503_v31 }
  0xbe   : > { %517 = vst.msk [vmem:[#allocation2 + $0x28] sm:$0xff] %vm511_vm2, %v484_v35  ;;  %v629_v41 = vmax.f32 %v613_v29, %v614_v37 }
  0xbf   : > { %v434_v42 = vpop.f32.mrf.mxu2  ;;  %v458_v43 = vpop.f32.mrf.mxu3  ;;  %v633_v44 = vmax.f32 %v617_v32, %v618_v40 }
  0xc0   : > { %v435_v45 = vadd.f32 %v1393_v36, %v434_v42  ;;  %v459_v46 = vadd.f32 %v1393_v36, %v458_v43  ;;  %v401_v47 = vpop.f32.mrf.mxu0  ;;  %630 = vst.msk [vmem:[#allocation3 + $0x18] sm:$0xff] %vm511_vm2, %v629_v41 }
  0xc1   : > { %v402_v48 = vadd.f32 %v1393_v36, %v401_v47  ;;  %634 = vst.msk [vmem:[#allocation3 + $0x28] sm:$0xff] %vm511_vm2, %v633_v44 }
  0xc2   : > { %v496_v49 = vmax.f32 %v435_v45, 0.0  ;;  %v504_v50 = vmax.f32 %v459_v46, 0.0 }
  0xc3   : > { %v485_v51 = vmax.f32 %v402_v48, 0.0 }
  0xc4   : > { %529 = vst.msk [vmem:[#allocation2 + $0x88] sm:$0xff] %vm511_vm2, %v496_v49 }
  0xc5   : > { %537 = vst.msk [vmem:[#allocation2 + $0xc8] sm:$0xff] %vm511_vm2, %v504_v50  ;;  %v548_v7 = vld [vmem:[#allocation2 + $0x20] ss:$2 sm:$0xff]  ;;  %v580_v8 = vld [vmem:[#allocation2 + $0x21] ss:$2 sm:$0xff] }
  0xc6   : > { %518 = vst.msk [vmem:[#allocation2 + $0x30] sm:$0xff] %vm511_vm2, %v485_v51  ;;  %v609_v12 = vmax.f32 %v548_v7, %v580_v8 }
  0xc7   : > { %v437_v53 = vpop.f32.mrf.mxu2  ;;  %v461_v54 = vpop.f32.mrf.mxu3 }
  0xc8   : > { %v438_v56 = vadd.f32 %v1393_v36, %v437_v53  ;;  %v462_v57 = vadd.f32 %v1393_v36, %v461_v54  ;;  %v404_v58 = vpop.f32.mrf.mxu0 }
  0xc9   : > { %v405_v59 = vadd.f32 %v1393_v36, %v404_v58 }
  0xca   : > { %v497_v60 = vmax.f32 %v438_v56, 0.0  ;;  %v505_v61 = vmax.f32 %v462_v57, 0.0 }
  0xcb   : > { %v486_v62 = vmax.f32 %v405_v59, 0.0  ;;  %v560_v14 = vld [vmem:[#allocation2 + $0x80] ss:$2 sm:$0xff]  ;;  %v592_v15 = vld [vmem:[#allocation2 + $0x81] ss:$2 sm:$0xff] }
  0xcc   : > { %530 = vst.msk [vmem:[#allocation2 + $0x90] sm:$0xff] %vm511_vm2, %v497_v60  ;;  %v568_v17 = vld [vmem:[#allocation2 + $0xc0] ss:$2 sm:$0xff]  ;;  %v600_v18 = vld [vmem:[#allocation2 + $0xc1] ss:$2 sm:$0xff]  ;;  %v615_v23 = vmax.f32 %v560_v14, %v592_v15  ;;  %v1500_v15 = vld [vmem:[#allocation3 + $0x18] sm:$0xff] }
  0xcd   : > { %538 = vst.msk [vmem:[#allocation2 + $0xd0] sm:$0xff] %vm511_vm2, %v505_v61  ;;  %v619_v25 = vmax.f32 %v568_v17, %v600_v18 }
  0xce   : > { %519 = vst.msk [vmem:[#allocation2 + $0x38] sm:$0xff] %vm511_vm2, %v486_v62 }
  0xcf   : > { %v440_v63 = vpop.f32.mrf.mxu2  ;;  %v464_v0 = vpop.f32.mrf.mxu3 }
  0xd0   : > { %v441_v1 = vadd.f32 %v1393_v36, %v440_v63  ;;  %v465_v2 = vadd.f32 %v1393_v36, %v464_v0  ;;  %v407_v3 = vpop.f32.mrf.mxu0 }
  0xd1   : > { %v408_v4 = vadd.f32 %v1393_v36, %v407_v3 }
  0xd2   : > { %v498_v5 = vmax.f32 %v441_v1, 0.0  ;;  %v506_v6 = vmax.f32 %v465_v2, 0.0 }
  0xd3   : > { %v487_v9 = vmax.f32 %v408_v4, 0.0 }
  0xd4   : > { %531 = vst.msk [vmem:[#allocation2 + $0x98] sm:$0xff] %vm511_vm2, %v498_v5 }
  0xd5   : > { %v550_v10 = vld [vmem:[#allocation2 + $0x30] ss:$2 sm:$0xff]  ;;  %v582_v11 = vld [vmem:[#allocation2 + $0x31] ss:$2 sm:$0xff]  ;;  %539 = vst.msk [vmem:[#allocation2 + $0xd8] sm:$0xff] %vm511_vm2, %v506_v6 }
  0xd6   : > { %v610_v13 = vmax.f32 %v550_v10, %v582_v11  ;;  %520 = vst.msk [vmem:[#allocation2 + $0x40] sm:$0xff] %vm511_vm2, %v487_v9 }
  0xd7   : > { %v467_v16 = vpop.f32.mrf.mxu3 }
  0xd8   : > { %v468_v19 = vadd.f32 %v1393_v36, %v467_v16  ;;  %v410_v20 = vpop.f32.mrf.mxu0  ;;  %v625_v21 = vmax.f32 %v609_v12, %v610_v13 }
  0xd9   : > { %v411_v22 = vadd.f32 %v1393_v36, %v410_v20 }
  0xda   : > { %v507_v24 = vmax.f32 %v468_v19, 0.0  ;;  %626 = vst.msk [vmem:[#allocation3 + $0x8] sm:$0xff] %vm511_vm2, %v625_v21 }
  0xdb   : > { %v562_v26 = vld [vmem:[#allocation2 + $0x90] ss:$2 sm:$0xff]  ;;  %v594_v27 = vld [vmem:[#allocation2 + $0x91] ss:$2 sm:$0xff]  ;;  %v488_v28 = vmax.f32 %v411_v22, 0.0 }
  0xdc   : > { %v616_v29 = vmax.f32 %v562_v26, %v594_v27  ;;  %v570_v30 = vld [vmem:[#allocation2 + $0xd0] ss:$2 sm:$0xff]  ;;  %v602_v31 = vld [vmem:[#allocation2 + $0xd1] ss:$2 sm:$0xff]  ;;  %540 = vst.msk [vmem:[#allocation2 + $0xe0] sm:$0xff] %vm511_vm2, %v507_v24 }
  0xdd   : > { %v620_v32 = vmax.f32 %v570_v30, %v602_v31  ;;  %521 = vst.msk [vmem:[#allocation2 + $0x48] sm:$0xff] %vm511_vm2, %v488_v28  ;;  %v650_v31 = vld [vmem:[#allocation3 + $0x29] sm:$0x3f] }
  0xde   : > { %v631_v33 = vmax.f32 %v615_v23, %v616_v29 }
  0xdf   : > { %v470_v34 = vpop.f32.mrf.mxu3  ;;  %v635_v35 = vmax.f32 %v619_v25, %v620_v32 }
  0xe0   : > { %v471_v37 = vadd.f32 %v1393_v36, %v470_v34  ;;  %v413_v38 = vpop.f32.mrf.mxu0  ;;  %632 = vst.msk [vmem:[#allocation3 + $0x20] sm:$0xff] %vm511_vm2, %v631_v33  ;;  %v657_v34 = vld [vmem:[#allocation3 + $0x28] sm:$0xff] }
  0xe1   : > { %v414_v39 = vadd.f32 %v1393_v36, %v413_v38  ;;  %636 = vst.msk [vmem:[#allocation3 + $0x30] sm:$0xff] %vm511_vm2, %v635_v35  ;;  %v1486_v4 = vld [vmem:[#allocation3 + $0x8] sm:$0xff] }
  0xe2   : > { %v508_v40 = vmax.f32 %v471_v37, 0.0  ;;  %v645_v11 = vld [vmem:[#allocation3 + $0x1] sm:$0xff] }
  0xe3   : > { %v489_v41 = vmax.f32 %v414_v39, 0.0  ;;  %v651_v16 = vld [vmem:[#allocation3 + $0x2] sm:$0xff] }
  0xe4   : > { %541 = vst.msk [vmem:[#allocation2 + $0xe8] sm:$0xff] %vm511_vm2, %v508_v40  ;;  %v552_v53 = vld [vmem:[#allocation2 + $0x40] ss:$2 sm:$0xff]  ;;  %v584_v54 = vld [vmem:[#allocation2 + $0x41] ss:$2 sm:$0xff] }
  0xe5   : > { %522 = vst.msk [vmem:[#allocation2 + $0x50] sm:$0xff] %vm511_vm2, %v489_v41  ;;  %v611_v59 = vmax.f32 %v552_v53, %v584_v54  ;;  %v656_v41 = vld [vmem:[#allocation3 + $0x2a] sm:$0x3f]  ;;  %v880_v53 = vld [vmem:[%s1663_s3 + $0x58] sm:$0xff]  ;;  %v879_v54 = vld [vmem:[%s1663_s3 + $0x50] sm:$0xff] }
  0xe7   : > { %v473_v42 = vpop.f32.mrf.mxu3  ;;  %v1471_v43 = vld [vmem:[#allocation3 + $0x22] sm:$0xff]  ;;  %v1507_v21 = vld [vmem:[#allocation3 + $0x1a] sm:$0xff] }
  0xe8   : > { %v474_v44 = vadd.f32 %v1393_v36, %v473_v42  ;;  %1125 = vmatmul.msk.f32.vlgmr.msrb.gmra.mxu2 %vm511_vm2, %v1471_v43  ;;  %v416_v45 = vpop.f32.mrf.mxu0  ;;  %v1479_v50 = vld [vmem:[#allocation3 + $0x2a] sm:$0xff]  ;;  %v648_v22 = vld [vmem:[#allocation3 + $0x19] sm:$0xff]  ;;  %v649_v23 = vld [vmem:[#allocation3 + $0x21] sm:$0xff]  ;;  %v1203_v24 = vpack.i.bf16 %v1471_v43, %v1507_v21  ;;  %v1233_v42 = vpack.i.bf16 %v656_v41, %v1471_v43 }
  0xe9   : > { %v417_v46 = vadd.f32 %v1393_v36, %v416_v45  ;;  %v1198_v25 = vpack.i.bf16 %v649_v23, %v648_v22  ;;  %v1515_v27 = vld [vmem:[#allocation3 + $0x20] sm:$0xff]  ;;  %v659_v30 = vld [vmem:[#allocation3 + $0x29] sm:$0xff]  ;;  %v1228_v32 = vpack.i.bf16 %v650_v31, %v649_v23  ;;  %v660_v37 = vld [vmem:[#allocation3 + $0x31] sm:$0x3f] }
  0xea   : > { %v509_v47 = vmax.f32 %v474_v44, 0.0  ;;  %v1193_v29 = vpack.i.bf16 %v1515_v27, %v1500_v15  ;;  %v1218_v33 = vpack.i.bf16 %v659_v30, %v649_v23  ;;  %v1208_v35 = vpack.i.bf16 %v657_v34, %v1515_v27  ;;  %v658_v38 = vld [vmem:[#allocation3 + $0x30] sm:$0x3f] }
  0xeb   : > { %v490_v48 = vmax.f32 %v417_v46, 0.0  ;;  %v572_v61 = vld [vmem:[#allocation2 + $0xe0] ss:$2 sm:$0xff]  ;;  %v604_v62 = vld [vmem:[#allocation2 + $0xe1] ss:$2 sm:$0xff]  ;;  %v1243_v39 = vpack.i.bf16 %v660_v37, %v659_v30  ;;  %v1238_v40 = vpack.i.bf16 %v658_v38, %v657_v34  ;;  %v663_v45 = vld [vmem:[#allocation3 + $0x30] sm:$0xff] }
  0xec   : > { %542 = vst.msk [vmem:[#allocation2 + $0xf0] sm:$0xff] %vm511_vm2, %v509_v47  ;;  %v621_v0 = vmax.f32 %v572_v61, %v604_v62  ;;  %v662_v43 = vld [vmem:[#allocation3 + $0x32] sm:$0x3f]  ;;  %v873_v61 = vld [vmem:[%s1663_s3 + $0x20] sm:$0xff]  ;;  %v872_v62 = vld [vmem:[%s1663_s3 + $0x18] sm:$0xff] }
  0xed   : > { %523 = vst.msk [vmem:[#allocation2 + $0x58] sm:$0xff] %vm511_vm2, %v490_v48  ;;  %v884_v48 = vld [vmem:[%s1663_s3 + $0x78] sm:$0xff] }
  0xee   : > { %905 = vmatpush.msra.mxu1 %v884_v48 }
  0xef   : > { %v476_v49 = vpop.f32.mrf.mxu3 }
  0xf0   : > { %v477_v51 = vadd.f32 %v1393_v36, %v476_v49  ;;  %1126 = vmatmul.msk.f32.gmra.mxu2 %vm511_vm2, %v1479_v50  ;;  %v883_v49 = vld [vmem:[%s1663_s3 + $0x70] sm:$0xff] }
  0xf1   : > { %906 = vmatpush.msra.mxu1 %v883_v49 }
  0xf2   : > { %v510_v56 = vmax.f32 %v477_v51, 0.0  ;;  %v881_v51 = vld [vmem:[%s1663_s3 + $0x60] sm:$0xff] }
  0xf4   : > { %v554_v57 = vld [vmem:[#allocation2 + $0x50] ss:$2 sm:$0xff]  ;;  %v586_v58 = vld [vmem:[#allocation2 + $0x51] ss:$2 sm:$0xff]  ;;  %543 = vst.msk [vmem:[#allocation2 + $0xf8] sm:$0xff] %vm511_vm2, %v510_v56  ;;  %v878_v56 = vld [vmem:[%s1663_s3 + $0x48] sm:$0xff] }
  0xf5   : > { %v612_v60 = vmax.f32 %v554_v57, %v586_v58  ;;  %v877_v57 = vld [vmem:[%s1663_s3 + $0x40] sm:$0xff]  ;;  %v876_v58 = vld [vmem:[%s1663_s3 + $0x38] sm:$0xff] }
  0xf7   : > { %v627_v63 = vmax.f32 %v611_v59, %v612_v60  ;;  %v875_v59 = vld [vmem:[%s1663_s3 + $0x30] sm:$0xff]  ;;  %v874_v60 = vld [vmem:[%s1663_s3 + $0x28] sm:$0xff] }
  0xf9   : > { %628 = vst.msk [vmem:[#allocation3 + $0x10] sm:$0xff] %vm511_vm2, %v627_v63  ;;  %v871_v63 = vld [vmem:[%s1663_s3 + $0x10] sm:$0xff] }
  0xfb   : > { %v574_v1 = vld [vmem:[#allocation2 + $0xf0] ss:$2 sm:$0xff]  ;;  %v606_v36 = vld [vmem:[#allocation2 + $0xf1] ss:$2 sm:$0xff] }
  0xfc   : > { %v622_v2 = vmax.f32 %v574_v1, %v606_v36  ;;  %v869_v1 = vld [vmem:[%s1663_s3] sm:$0xff] }
  0xfe   : > { %v637_v3 = vmax.f32 %v621_v0, %v622_v2  ;;  %v870_v0 = vld [vmem:[%s1663_s3 + $0x8] sm:$0xff] }
 0x100   : > { %v652_v5 = vld [vmem:[#allocation3 + $0xa] sm:$0xff]  ;;  %v1488_v6 = vld [vmem:[#allocation3 + $0x12] sm:$0xff]  ;;  %638 = vst.msk [vmem:[#allocation3 + $0x38] sm:$0xff] %vm511_vm2, %v637_v3 }
 0x101   : > { %v1490_v7 = vld [vmem:[#allocation3 + $0x10] sm:$0xff]  ;;  %v1178_v8 = vpack.i.bf16 %v1488_v6, %v652_v5  ;;  %v1163_v19 = vpack.i.bf16 %v652_v5, %v651_v16  ;;  %v1223_v28 = vpack.i.bf16 %v1507_v21, %v1488_v6 }
 0x102   : > { %v1168_v9 = vpack.i.bf16 %v1490_v7, %v1486_v4  ;;  %v646_v10 = vld [vmem:[#allocation3 + $0x9] sm:$0xff]  ;;  %v647_v13 = vld [vmem:[#allocation3 + $0x11] sm:$0xff]  ;;  %v1183_v18 = vpack.i.bf16 %v1500_v15, %v1490_v7 }
 0x103   : > { %v1158_v12 = vpack.i.bf16 %v646_v10, %v645_v11  ;;  %1179 = vrot.lane.b32.xlu2 %v1178_v8, %s1258_s13  ;;  %v1173_v17 = vpack.i.bf16 %v647_v13, %v646_v10  ;;  %v1188_v26 = vpack.i.bf16 %v648_v22, %v647_v13  ;;  %v639_v13 = vld [vmem:[#allocation3] sm:$0xff] }
 0x104   : > { %1169 = vrot.lane.b32.xlu1 %v1168_v9, %s1259_s14 }
 0x105   : > { %1159 = vrot.lane.b32.xlu0 %v1158_v12, %s1260_s15 }
 0x107   : > { %v667_v14 = vld [vmem:[#allocation3 + $0x32] sm:$0xff]  ;;  %v668_v20 = vld [vmem:[#allocation3 + $0x3a] sm:$0x3f] }
 0x108   : > { %1127 = vmatmul.msk.f32.gmra.mxu2 %vm511_vm2, %v667_v14  ;;  %v665_v44 = vld [vmem:[#allocation3 + $0x31] sm:$0xff]  ;;  %v666_v46 = vld [vmem:[#allocation3 + $0x39] sm:$0x3f] }
 0x109   : > { %v664_v47 = vld [vmem:[#allocation3 + $0x38] sm:$0x3f] }
 0x10b   : > { %1184 = vrot.lane.b32.xlu2 %v1183_v18, %s1261_s16 }
 0x10c   : > { %1174 = vrot.lane.b32.xlu1 %v1173_v17, %s1262_s17 }
 0x10d   : > { %1164 = vrot.lane.b32.xlu0 %v1163_v19, %s1263_s20 }
 0x110   : > { %1128 = vmatmul.msk.f32.gmra.mxu2 %vm511_vm2, %v668_v20 }
 0x113   : > { %1204 = vrot.lane.b32.xlu2 %v1203_v24, %s1258_s13 }
 0x114   : > { %1199 = vrot.lane.b32.xlu1 %v1198_v25, %s1262_s17 }
 0x115   : > { %1189 = vrot.lane.b32.xlu0 %v1188_v26, %s1264_s21 }
 0x11b   : > { %1224 = vrot.lane.b32.xlu2 %v1223_v28, %s1263_s20 }
 0x11c   : > { %1214 = vrot.lane.b32.xlu1 %v1188_v26, %s1260_s15 }
 0x11d   : > { %1194 = vrot.lane.b32.xlu0 %v1193_v29, %s1259_s14 }
 0x123   : > { %1229 = vrot.lane.b32.xlu2 %v1228_v32, %s1260_s15 }
 0x124   : > { %1219 = vrot.lane.b32.xlu1 %v1218_v33, %s1264_s21 }
 0x125   : > { %1209 = vrot.lane.b32.xlu0 %v1208_v35, %s1261_s16 }
 0x12b   : > { %1244 = vrot.lane.b32.xlu2 %v1243_v39, %s1262_s17 }
 0x12c   : > { %1239 = vrot.lane.b32.xlu1 %v1238_v40, %s1259_s14 }
 0x12d   : > { %1234 = vrot.lane.b32.xlu0 %v1233_v42, %s1263_s20 }
 0x133   : > { %811 = vrot.lane.b32.xlu2 %v665_v44, %s1264_s21 }
 0x134   : > { %791 = vrot.lane.b32.xlu1 %v663_v45, %s1261_s16 }
 0x135   : > { %771 = vrot.lane.b32.xlu0 %v1479_v50, %s1258_s13  ;;  %v882_v50 = vld [vmem:[%s1663_s3 + $0x68] sm:$0xff] }
 0x136   : > { %907 = vmatpush.msra.mxu1 %v882_v50 }
 0x138   : > { %908 = vmatpush.msra.mxu1 %v881_v51 }
 0x13a   : > { %909 = vmatpush.msra.mxu1 %v880_v53 }
 0x13b   : > { %813 = vrot.lane.b32.xlu2 %v666_v46, %s1264_s21 }
 0x13c   : > { %793 = vrot.lane.b32.xlu1 %v664_v47, %s1261_s16  ;;  %910 = vmatpush.msra.mxu1 %v879_v54 }
 0x13d   : > { %773 = vrot.lane.b32.xlu0 %v662_v43, %s1258_s13 }
 0x13e   : > { %911 = vmatpush.msra.mxu1 %v878_v56 }
 0x140   : > { %912 = vmatpush.msra.mxu1 %v877_v57 }
 0x142   : > { %913 = vmatpush.msra.mxu1 %v876_v58 }
 0x144   : > { %914 = vmatpush.msra.mxu1 %v875_v59 }
 0x146   : > { %915 = vmatpush.msra.mxu1 %v874_v60 }
 0x148   : > { %916 = vmatpush.msra.mxu1 %v873_v61 }
 0x14a   : > { %917 = vmatpush.msra.mxu1 %v872_v62 }
 0x14c   : > { %918 = vmatpush.msra.mxu1 %v871_v63 }
 0x14e   : > { %919 = vmatpush.msra.mxu1 %v870_v0 }
 0x150   : > { %920 = vmatpush.msra.mxu1 %v869_v1 }
 0x152   : > { %954 = vmatpush.msrb.mxu1 %v1438_v52 }
 0x154   : > { %955 = vmatpush.msrb.mxu1 %v1445_v55 }
 0x15d   : > { %v1180_v36 = vpop.permute.xlu2 %1179 }
 0x15e   : > { %v1181_v20 = vunpack.i.l.bf16 %v1180_v36  ;;  %v1182_v38 = vunpack.i.h.bf16 %v1180_v36 }
 0x165   : > { %v1185_v2 = vpop.permute.xlu2 %1184 }
 0x166   : > { %v1186_v29 = vunpack.i.l.bf16 %v1185_v2  ;;  %v1187_v42 = vunpack.i.h.bf16 %v1185_v2 }
 0x16d   : > { %v1589_v10 = vpop.permute.xlu2 %1204 }
 0x16e   : > { %v1206_v61 = vunpack.i.l.bf16 %v1589_v10 }
 0x175   : > { %v1225_v33 = vpop.permute.xlu2 %1224 }
 0x176   : > { %v1170_v3 = vpop.permute.xlu1 %1169  ;;  %v1226_v47 = vunpack.i.l.bf16 %v1225_v33  ;;  %v1227_v57 = vunpack.i.h.bf16 %v1225_v33 }
 0x177   : > { %v1160_v5 = vpop.permute.xlu0 %1159  ;;  %v1171_v16 = vunpack.i.l.bf16 %v1170_v3  ;;  %v1172_v25 = vunpack.i.h.bf16 %v1170_v3 }
 0x178   : > { %v1161_v8 = vunpack.i.l.bf16 %v1160_v5  ;;  %v1162_v12 = vunpack.i.h.bf16 %v1160_v5 }
 0x17a   : > { %v821_v17 = vsel %vm511_vm2, %v639_v13, %v1161_v8  ;;  %v822_v22 = vsel %vm511_vm2, %v1486_v4, %v1162_v12 }
 0x17d   : > { %v1230_v53 = vpop.permute.xlu2 %1229 }
 0x17e   : > { %v1175_v9 = vpop.permute.xlu1 %1174  ;;  %v1231_v12 = vunpack.i.l.bf16 %v1230_v53 }
 0x17f   : > { %v1165_v11 = vpop.permute.xlu0 %1164  ;;  %v1176_v52 = vunpack.i.l.bf16 %v1175_v9  ;;  %v1177_v34 = vunpack.i.h.bf16 %v1175_v9 }
 0x180   : > { %v1166_v14 = vunpack.i.l.bf16 %v1165_v11  ;;  %v1167_v18 = vunpack.i.h.bf16 %v1165_v11  ;;  %v1207_v11 = vunpack.i.h.bf16 %v1589_v10 }
 0x182   : > { %v828_v55 = vsel %vm827_vm3, %v821_v17, %v1166_v14  ;;  %v829_v24 = vsel %vm827_vm3, %v822_v22, %v1167_v18 }
 0x183   : > { %v835_v19 = vsel %vm834_vm4, %v828_v55, %v1171_v16  ;;  %v836_v31 = vsel %vm834_vm4, %v829_v24, %v1172_v25  ;;  %v1232_v24 = vunpack.i.h.bf16 %v1230_v53 }
 0x184   : > { %v842_v23 = vsel %vm841_vm5, %v835_v19, %v1176_v52  ;;  %v843_v37 = vsel %vm841_vm5, %v836_v31, %v1177_v34 }
 0x185   : > { %v849_v28 = vsel %vm848_vm6, %v842_v23, %v1181_v20  ;;  %v850_v41 = vsel %vm848_vm6, %v843_v37, %v1182_v38  ;;  %v1245_v13 = vpop.permute.xlu2 %1244  ;;  %v825_v20 = vsel %vm511_vm2, %v1515_v27, %v1231_v12 }
 0x186   : > { %v1200_v26 = vpop.permute.xlu1 %1199  ;;  %v856_v35 = vsel %vm855_vm7, %v849_v28, %v1186_v29  ;;  %v857_v49 = vsel %vm855_vm7, %v850_v41, %v1187_v42  ;;  %v1246_v25 = vunpack.i.l.bf16 %v1245_v13  ;;  %v644_v29 = vld [vmem:[#allocation3 + $0x28] sm:$0x3f] }
 0x187   : > { %v1190_v30 = vpop.permute.xlu0 %1189  ;;  %v1201_v58 = vunpack.i.l.bf16 %v1200_v26  ;;  %v1202_v2 = vunpack.i.h.bf16 %v1200_v26  ;;  %v826_v33 = vsel %vm511_vm2, %v644_v29, %v1232_v24 }
 0x188   : > { %v1191_v32 = vunpack.i.l.bf16 %v1190_v30  ;;  %v1192_v39 = vunpack.i.h.bf16 %v1190_v30 }
 0x18a   : > { %v863_v4 = vsel %vm862_vm8, %v856_v35, %v1191_v32  ;;  %v864_v51 = vsel %vm862_vm8, %v857_v49, %v1192_v39  ;;  %v1247_v39 = vunpack.i.h.bf16 %v1245_v13  ;;  %v1249_v49 = vld [vmem:[%s1664_s4] ss:$0 sm:$0xff] }
 0x18b   : > { %921 = vmatmul.f32.vlgmr.msra.gmra.mxu1 %v863_v4 }
 0x18d   : > { %v812_v30 = vpop.permute.xlu2 %811 }
 0x18e   : > { %v1215_v40 = vpop.permute.xlu1 %1214 }
 0x18f   : > { %v1217_v44 = vunpack.i.h.bf16 %v1215_v40  ;;  %v1216_v45 = vunpack.i.l.bf16 %v1215_v40  ;;  %v1195_v46 = vpop.permute.xlu0 %1194 }
 0x190   : > { %v1196_v48 = vunpack.i.l.bf16 %v1195_v46  ;;  %v1197_v62 = vunpack.i.h.bf16 %v1195_v46 }
 0x191   : > { %v823_v43 = vsel %vm511_vm2, %v1490_v7, %v1216_v45  ;;  %v824_v54 = vsel %vm511_vm2, %v1500_v15, %v1217_v44 }
 0x192   : > { %v830_v50 = vsel %vm827_vm3, %v823_v43, %v1226_v47  ;;  %v831_v59 = vsel %vm827_vm3, %v824_v54, %v1227_v57 }
 0x193   : > { %v837_v56 = vsel %vm834_vm4, %v830_v50, %v1196_v48  ;;  %924 = vmatmul.f32.gmra.mxu1 %v864_v51  ;;  %v838_v36 = vsel %vm834_vm4, %v831_v59, %v1197_v62  ;;  %v963_v50 = vpop.f32.mrf.mxu2 }
 0x194   : > { %v844_v7 = vsel %vm841_vm5, %v837_v56, %v1201_v58  ;;  %v845_v9 = vsel %vm841_vm5, %v838_v36, %v1202_v2 }
 0x195   : > { %v851_v15 = vsel %vm848_vm6, %v844_v7, %v1206_v61  ;;  %v852_v18 = vsel %vm848_vm6, %v845_v9, %v1207_v11  ;;  %v814_v45 = vpop.permute.xlu2 %813 }
 0x196   : > { %v1220_v60 = vpop.permute.xlu1 %1219 }
 0x197   : > { %v1221_v63 = vunpack.i.l.bf16 %v1220_v60  ;;  %v1210_v0 = vpop.permute.xlu0 %1209  ;;  %v1222_v16 = vunpack.i.h.bf16 %v1220_v60 }
 0x198   : > { %v1211_v1 = vunpack.i.l.bf16 %v1210_v0  ;;  %v1212_v8 = vunpack.i.h.bf16 %v1210_v0 }
 0x19a   : > { %v858_v3 = vsel %vm855_vm7, %v851_v15, %v1211_v1  ;;  %v859_v19 = vsel %vm855_vm7, %v852_v18, %v1212_v8 }
 0x19b   : > { %v865_v5 = vsel %vm862_vm8, %v858_v3, %v1221_v63  ;;  %v866_v23 = vsel %vm862_vm8, %v859_v19, %v1222_v16  ;;  %v966_v59 = vpop.f32.mrf.mxu2 }
 0x19c   : > { %927 = vmatmul.f32.gmra.mxu1 %v865_v5 }
 0x19e   : > { %v1240_v14 = vpop.permute.xlu1 %1239 }
 0x19f   : > { %v1235_v17 = vpop.permute.xlu0 %1234  ;;  %v1241_v52 = vunpack.i.l.bf16 %v1240_v14  ;;  %v1242_v34 = vunpack.i.h.bf16 %v1240_v14 }
 0x1a0   : > { %v1236_v55 = vunpack.i.l.bf16 %v1235_v17  ;;  %v1237_v26 = vunpack.i.h.bf16 %v1235_v17 }
 0x1a2   : > { %v832_v22 = vsel %vm827_vm3, %v825_v20, %v1236_v55  ;;  %v833_v35 = vsel %vm827_vm3, %v826_v33, %v1237_v26 }
 0x1a3   : > { %v839_v10 = vsel %vm834_vm4, %v832_v22, %v1241_v52  ;;  %v840_v38 = vsel %vm834_vm4, %v833_v35, %v1242_v34  ;;  %v969_v61 = vpop.f32.mrf.mxu2 }
 0x1a4   : > { %930 = vmatmul.f32.gmra.mxu1 %v866_v23  ;;  %v846_v32 = vsel %vm841_vm5, %v839_v10, %v1246_v25  ;;  %v847_v42 = vsel %vm841_vm5, %v840_v38, %v1247_v39 }
 0x1a6   : > { %v792_v28 = vpop.permute.xlu1 %791 }
 0x1a7   : > { %v772_v31 = vpop.permute.xlu0 %771 }
 0x1a8   : > { %v853_v27 = vsel %vm848_vm6, %v846_v32, %v772_v31 }
 0x1a9   : > { %v860_v4 = vsel %vm855_vm7, %v853_v27, %v792_v28 }
 0x1aa   : > { %v867_v37 = vsel %vm862_vm8, %v860_v4, %v812_v30 }
 0x1ab   : > { %v972_v36 = vpop.f32.mrf.mxu2 }
 0x1ac   : > { %933 = vmatmul.f32.gmra.mxu1 %v867_v37 }
 0x1ae   : > { %v794_v40 = vpop.permute.xlu1 %793 }
 0x1af   : > { %v774_v41 = vpop.permute.xlu0 %773 }
 0x1b0   : > { %v854_v44 = vsel %vm848_vm6, %v847_v42, %v774_v41 }
 0x1b1   : > { %v861_v46 = vsel %vm855_vm7, %v854_v44, %v794_v40 }
 0x1b2   : > { %v868_v47 = vsel %vm862_vm8, %v861_v46, %v814_v45 }
 0x1b4   : > { %936 = vmatmul.f32.gmra.mxu1 %v868_v47 }
 0x1bc   : > { %1123 = vmatmul.msk.f32.vlgmr.msrb.gmra.mxu1 %vm511_vm2, %v1488_v6 }
 0x1c4   : > { %1124 = vmatmul.msk.f32.gmra.mxu1 %vm511_vm2, %v1507_v21 }
 0x208   : > { %v922_v43 = vpop.f32.mrf.mxu1 }
 0x209   : > { %v923_v3 = vadd.f32 %v1249_v49, %v922_v43 }
 0x210   : > { %v925_v48 = vpop.f32.mrf.mxu1 }
 0x211   : > { %v926_v13 = vadd.f32 %v1249_v49, %v925_v48 }
 0x219   : > { %v928_v51 = vpop.f32.mrf.mxu1 }
 0x21a   : > { %v929_v53 = vadd.f32 %v1249_v49, %v928_v51 }
 0x21c   : > { %v964_v54 = vadd.f32 %v963_v50, %v929_v53 }
 0x21e   : > { %v977_v56 = vmax.f32 %v964_v54, 0.0 }
 0x220   : > { %983 = vst.msk [vmem:[#allocation4 + $0x10] sm:$0xff] %vm827_vm3, %v977_v56 }
 0x221   : > { %v931_v57 = vpop.f32.mrf.mxu1 }
 0x222   : > { %v932_v58 = vadd.f32 %v1249_v49, %v931_v57 }
 0x224   : > { %v967_v6 = vadd.f32 %v966_v59, %v932_v58 }
 0x226   : > { %v978_v60 = vmax.f32 %v967_v6, 0.0 }
 0x228   : > { %984 = vst.msk [vmem:[#allocation4 + $0x18] sm:$0xff] %vm827_vm3, %v978_v60 }
 0x229   : > { %v934_v21 = vpop.f32.mrf.mxu1 }
 0x22a   : > { %v935_v7 = vadd.f32 %v1249_v49, %v934_v21 }
 0x22c   : > { %v970_v62 = vadd.f32 %v969_v61, %v935_v7 }
 0x22e   : > { %v979_v63 = vmax.f32 %v970_v62, 0.0 }
 0x22f   : > { %v990_v52 = vld [vmem:[#allocation4 + $0x10] ss:$2 sm:$0xff]  ;;  %v996_v55 = vld [vmem:[#allocation4 + $0x11] ss:$2 sm:$0xff] }
 0x230   : > { %985 = vst.msk [vmem:[#allocation4 + $0x20] sm:$0xff] %vm827_vm3, %v979_v63  ;;  %v1000_v22 = vmax.f32 %v990_v52, %v996_v55 }
 0x231   : > { %v937_v0 = vpop.f32.mrf.mxu1 }
 0x232   : > { %v938_v1 = vadd.f32 %v1249_v49, %v937_v0  ;;  %v1007_v24 = vrot.slane %v1000_v22, 4 }
 0x234   : > { %v973_v15 = vadd.f32 %v972_v36, %v938_v1  ;;  %v1009_v26 = vmax.f32 %v1000_v22, %v1007_v24 }
 0x236   : > { %v980_v2 = vmax.f32 %v973_v15, 0.0  ;;  %v1015_v30 = vrot.slane %v1009_v26, 5 }
 0x238   : > { %987 = vst.msk [vmem:[#allocation4 + $0x28] sm:$0x3f] %vm986_vm9, %v980_v2 }
 0x239   : > { %v957_v5 = vpop.f32.mrf.mxu1 }
 0x23a   : > { %v958_v8 = vadd.f32 %v957_v5, %v923_v3 }
 0x23c   : > { %v975_v9 = vmax.f32 %v958_v8, 0.0 }
 0x23e   : > { %981 = vst.msk [vmem:[#allocation4] sm:$0xff] %vm827_vm3, %v975_v9 }
 0x23f   : > { %v992_v11 = vld [vmem:[#allocation4 + $0x20] ss:$2 sm:$0x7f]  ;;  %v998_v12 = vld [vmem:[#allocation4 + $0x21] ss:$2 sm:$0x7f] }
 0x240   : > { %v1001_v14 = vmax.f32 %v992_v11, %v998_v12 }
 0x241   : > { %v960_v16 = vpop.f32.mrf.mxu1 }
 0x242   : > { %v1011_v17 = vrot.slane %v1001_v14, 4  ;;  %v961_v18 = vadd.f32 %v960_v16, %v926_v13 }
 0x244   : > { %v1013_v19 = vmax.f32 %v1001_v14, %v1011_v17  ;;  %v976_v20 = vmax.f32 %v961_v18, 0.0 }
 0x246   : > { %v1018_v23 = vrot.slane %v1013_v19, 2  ;;  %982 = vst.msk [vmem:[#allocation4 + $0x8] sm:$0xff] %vm827_vm3, %v976_v20 }
 0x248   : > { %1025 = vst.msk [vmem:[%s224_s11 + $0x8] sm:$0x1] %vm1024_vm10, %v1018_v23 }
 0x24d   : > { %v988_v10 = vld [vmem:[#allocation4] ss:$2 sm:$0xff]  ;;  %v994_v25 = vld [vmem:[#allocation4 + $0x1] ss:$2 sm:$0xff] }
 0x24e   : > { %v999_v28 = vmax.f32 %v988_v10, %v994_v25 }
 0x250   : > { %v1003_v29 = vrot.slane %v999_v28, 4 }
 0x252   : > { %v1005_v31 = vmax.f32 %v999_v28, %v1003_v29 }
 0x254   : > { %v1020_v32 = vsel %vm362_vm0, %v1005_v31, %v1015_v30 }
 0x255   : > { %v1022_v33 = vsel %vm1021_vm11, %v1020_v32, %v1018_v23 }
 0x256   : > { %1023 = vst.msk [vmem:[%s224_s11] sm:$0xff] %vm827_vm3, %v1022_v33 }
 0x257 PF: > { %s15_s18 = sadd.s32 1, %s1256_s18  }
 0x258   : > { %p12_p4 = scmp.ge.s32.totalorder %s15_s18, 4  }
 0x25a   :  { %14 = sbr.rel (!%p12_p4) target bundleno = 1 (0x1), region = 106 }

</bundles_post_ra>
